<compile_context>
chip_gen: v6e
topology: v6e:2x2x1
jax: 0.10.0
libtpu: 0.0.40
codegen_flags: <defaults>
</compile_context>

<pallas_src>
import functools

import jax
import jax.numpy as jnp
from jax.experimental import pallas as pl
from jax.experimental.pallas import tpu as pltpu


def _round_up(x, m):
    return ((x + m - 1) // m) * m


def self_attention_kernel(x_ref, w1_ref, b1_ref, w2t_ref, out_ref, wts_ref,
                          *, t_valid, mxu_dtype):
    BB, Tp, Hp = x_ref.shape
    D = w1_ref.shape[1]
    Tw = wts_ref.shape[1]

    x = x_ref[...]                                                 # (BB, Tp, Hp) f32

    # ---- Linear(H, 64) + ReLU: one dense MXU matmul with M = BB*Tp rows. ----
    xm = x if jnp.dtype(mxu_dtype) == x.dtype else x.astype(mxu_dtype)
    w1 = w1_ref[...]
    w1m = w1 if jnp.dtype(mxu_dtype) == w1.dtype else w1.astype(mxu_dtype)
    h = jnp.dot(xm.reshape(BB * Tp, Hp), w1m,
                preferred_element_type=jnp.float32) + b1_ref[...]  # (BB*Tp, D)
    h = jnp.maximum(h, 0.0)

    # ---- Linear(64, 1): VPU broadcast-multiply + lane reduce (no N=1 matmul).
    # The second Linear's scalar bias b2 is dropped: softmax is shift-invariant.
    e = jnp.sum(h.reshape(BB, Tp, D) * w2t_ref[...], axis=-1)      # (BB, Tp)

    if t_valid < Tp:  # static branch: mask padded time steps before softmax
        col = jax.lax.broadcasted_iota(jnp.int32, (BB, Tp), 1)
        e = jnp.where(col < t_valid, e, jnp.float32(-1e30))

    # ---- Softmax over the sequence dim, lane-major (BB, Tp), exact norm. ----
    m = jnp.max(e, axis=-1, keepdims=True)                         # (BB, 1)
    p = jnp.exp(e - m)                                             # (BB, Tp)
    s = jnp.sum(p, axis=-1, keepdims=True)                         # (BB, 1)
    w = p / s                                                      # exact f32

    # ---- Weighted sum over T as a batched MXU matmul: (BB,1,Tp) @ (BB,Tp,Hp).
    # Avoids the lane->sublane relayout + (BB,Tp,Hp) broadcast temp of
    # w[:, :, None] * x on the VPU/XLU.
    out = jnp.einsum("bqt,bth->bqh", w[:, None, :], x,
                     preferred_element_type=jnp.float32)           # (BB, 1, Hp)
    out_ref[...] = out[:, 0, :]

    # ---- Lane-dense weights slab: zero-extend in VMEM (cheap) so the store is
    # an unmasked vst; the wrapper slices back to (B, T).
    if Tw > Tp:
        w = jnp.concatenate([w, jnp.zeros((BB, Tw - Tp), jnp.float32)], axis=-1)
    wts_ref[...] = w


# Per-generation sizing.  vmem_limit: scoped-VMEM ceiling handed to Mosaic.
# x_budget: bytes allowed for the per-step VMEM working set.  target_rows:
# desired BB*Tp rows per first-matmul MXU call.  min_blocks: keep at least this
# many grid steps so the "parallel" axis can shard across TensorCores (v7x has
# 2 TCs and only 64 MiB VMEM each).
_GEN_CFG = {
    "v5e": dict(vmem_limit=80 << 20, x_budget=48 << 20, target_rows=1024, min_blocks=1),
    "v6e": dict(vmem_limit=96 << 20, x_budget=56 << 20, target_rows=1536, min_blocks=1),
    "v7x": dict(vmem_limit=48 << 20, x_budget=20 << 20, target_rows=512,  min_blocks=2),
    None:  dict(vmem_limit=48 << 20, x_budget=20 << 20, target_rows=512,  min_blocks=1),
}


def _tpu_generation():
    try:
        kind = jax.devices()[0].device_kind.lower()
    except Exception:
        return None
    if "v5" in kind:
        return "v5e"
    if "v6" in kind:
        return "v6e"
    if "v7" in kind:
        return "v7x"
    return None


def _pick_block_b(B, Tp, Hp, D, Tw, *, target_rows, x_budget, min_blocks):
    """Largest useful multiple-of-8 batch block that fits the VMEM budget.

    Accounting (all f32, per batch element, *including* lane/sublane padding):
    the BlockSpec pipeline double-buffers the x tile and both output slabs; the
    hidden activation pads its D=64 lane dim to 128; scores/weights use one
    lane-padded row block.
    """
    lane = 128
    Dl = _round_up(D, lane)
    per_b = 4 * (2 * Tp * Hp                 # x tile, double-buffered
                 + Tp * Dl                   # hidden activation h
                 + _round_up(Tp, lane)       # e / p / w working rows
                 + 2 * (Hp + Tw))            # out + wts slabs, double-buffered
    bb_rows = max(1, -(-target_rows // Tp))  # hit >= target MXU rows per step
    bb_fit = max(1, x_budget // per_b)       # fit the per-generation budget
    bb = max(1, min(bb_rows, bb_fit, B))
    bb = max(8, _round_up(bb, 8))            # sublane-clean output tiles
    if min_blocks > 1 and B > 8:
        bb = min(bb, max(8, _round_up(-(-B // min_blocks), 8)))
    return bb


def self_attention(x, w1, b1, w2, b2=None, *, block_b=None,
                   mxu_dtype=jnp.float32, x_buffers=2):
    """x: (B, T, H) float32. Returns (outputs (B, H), weights (B, T)).

    b2 is accepted for API parity with the PyTorch module but unused: a constant
    added to every logit cancels under softmax.  Set mxu_dtype=jnp.bfloat16 on
    v6e/v7x to halve MXU passes of the first matmul (accumulation stays f32).
    """
    del b2
    B, T, H = x.shape
    D = w1.shape[1]  # 64

    cfg = _GEN_CFG.get(_tpu_generation(), _GEN_CFG[None])

    Hp = _round_up(H, 128)   # lane-dense `out` slab + aligned MXU K dim
    Tp = _round_up(T, 8)     # sublane-clean -> layout-free (BB,T)<->(BB*T) reshapes
    Tw = _round_up(Tp, 128)  # lane-dense weights slab (zero-extended in-kernel)

    if block_b is None:
        block_b = _pick_block_b(B, Tp, Hp, D, Tw,
                                target_rows=cfg["target_rows"],
                                x_budget=cfg["x_budget"],
                                min_blocks=cfg["min_blocks"])
    block_b = max(8, _round_up(block_b, 8))
    n_blocks = pl.cdiv(B, block_b)
    Bp = n_blocks * block_b

    xp = x
    if (Bp, Tp, Hp) != (B, T, H):
        xp = jnp.pad(x, ((0, Bp - B), (0, Tp - T), (0, Hp - H)))
    w1p = w1 if Hp == H else jnp.pad(w1, ((0, Hp - H), (0, 0)))
    b1_r = b1.reshape(1, D)
    w2_t = w2.reshape(1, D)  # (64, 1) -> (1, 64) so Linear(64,1) is a VPU reduce

    kernel = functools.partial(self_attention_kernel, t_valid=T, mxu_dtype=mxu_dtype)

    cost = pl.CostEstimate(
        flops=int(2 * Bp * Tp * Hp * D      # Linear(H,64) on the MXU
                  + 2 * Bp * Tp * D         # Linear(64,1) multiply + reduce
                  + 2 * Bp * Tp * Hp        # weighted sum
                  + 6 * Bp * Tp),           # softmax arithmetic
        transcendentals=int(Bp * Tp),
        bytes_accessed=int(4 * (Bp * Tp * Hp + Hp * D + 2 * D + Bp * Hp + Bp * Tw)),
    )

    x_spec_kwargs = {}
    if x_buffers != 2:
        # Optional triple-buffering for v5e/v6e if the trace still shows exposed
        # DMA after enlarging block_b (do NOT use on v7x's 64 MiB VMEM).
        x_spec_kwargs["pipeline_mode"] = pl.Buffered(x_buffers)

    out, wts = pl.pallas_call(
        kernel,
        out_shape=(
            jax.ShapeDtypeStruct((Bp, Hp), jnp.float32),
            jax.ShapeDtypeStruct((Bp, Tw), jnp.float32),
        ),
        grid_spec=pltpu.PrefetchScalarGridSpec(
            num_scalar_prefetch=0,
            grid=(n_blocks,),
            in_specs=[
                pl.BlockSpec((block_b, Tp, Hp), lambda b: (b, 0, 0),
                             **x_spec_kwargs),                      # x
                pl.BlockSpec((Hp, D), lambda b: (0, 0)),            # w1
                pl.BlockSpec((1, D), lambda b: (0, 0)),             # b1
                pl.BlockSpec((1, D), lambda b: (0, 0)),             # w2^T
            ],
            out_specs=[
                pl.BlockSpec((block_b, Hp), lambda b: (b, 0)),      # outputs
                pl.BlockSpec((block_b, Tw), lambda b: (b, 0)),      # weights
            ],
        ),
        compiler_params=pltpu.CompilerParams(
            dimension_semantics=("parallel",),
            vmem_limit_bytes=int(cfg["vmem_limit"]),
        ),
        cost_estimate=cost,
    )(xp, w1p, b1_r, w2_t)

    return out[:B, :H], wts[:B, :T]


def init_params(key, hidden_dim, inner_dim=64):
    # Deterministic init mimicking torch.nn.Linear default (uniform +/- 1/sqrt(fan_in)).
    k1, k2, k3, k4 = jax.random.split(key, 4)
    lim1 = 1.0 / jnp.sqrt(hidden_dim)
    lim2 = 1.0 / jnp.sqrt(inner_dim)
    w1 = jax.random.uniform(k1, (hidden_dim, inner_dim), jnp.float32, -lim1, lim1)
    b1 = jax.random.uniform(k2, (1, inner_dim), jnp.float32, -lim1, lim1)
    w2 = jax.random.uniform(k3, (inner_dim, 1), jnp.float32, -lim2, lim2)
    b2 = jax.random.uniform(k4, (1, 1), jnp.float32, -lim2, lim2)
    return w1, b1, w2, b2


def reference(x, w1, b1, w2, b2):
    # Pure-JAX reference of the PyTorch forward (kept in true f32 precision).
    hi = jax.lax.Precision.HIGHEST
    h = jnp.maximum(jnp.einsum("bth,hd->btd", x, w1, precision=hi) + b1[0], 0.0)
    e = (jnp.einsum("btd,do->bto", h, w2, precision=hi) + b2[0])[..., 0]   # (B, T)
    wts = jax.nn.softmax(e, axis=1)                                        # (B, T)
    out = jnp.sum(x * wts[..., None], axis=1)                              # (B, H)
    return out, wts


if __name__ == "__main__":
    B, T, H = 2, 8, 32
    key = jax.random.PRNGKey(0)
    kx, kp = jax.random.split(key)
    x = jax.random.normal(kx, (B, T, H), dtype=jnp.float32)
    w1, b1, w2, b2 = init_params(kp, H)

    out, wts = self_attention(x, w1, b1, w2, b2)
    out = jax.block_until_ready(out)
    wts = jax.block_until_ready(wts)

    ref_out, ref_wts = reference(x, w1, b1, w2, b2)
    assert out.shape == (B, H) and wts.shape == (B, T)
    assert jnp.allclose(out, ref_out, atol=1e-3, rtol=1e-3), \
        float(jnp.max(jnp.abs(out - ref_out)))
    assert jnp.allclose(wts, ref_wts, atol=1e-3, rtol=1e-3), \
        float(jnp.max(jnp.abs(wts - ref_wts)))
    assert jnp.allclose(jnp.sum(wts, axis=1), 1.0, atol=1e-5)  # exact normalization

    print("KERNEL_OK")
</pallas_src>

<mosaic_0001>
module attributes {stable_mosaic.version = 11 : i64} {
  func.func @self_attention_kernel(%arg0: i32, %arg1: memref<8x8x128xf32, #tpu.memory_space<vmem>>, %arg2: memref<128x64xf32, #tpu.memory_space<vmem>>, %arg3: memref<1x64xf32, #tpu.memory_space<vmem>>, %arg4: memref<1x64xf32, #tpu.memory_space<vmem>>, %arg5: memref<8x128xf32, #tpu.memory_space<vmem>>, %arg6: memref<8x128xf32, #tpu.memory_space<vmem>>) attributes {dimension_semantics = [#tpu.dimension_semantics<parallel>], iteration_bounds = array<i64: 1>, scalar_prefetch = 0 : i64, scratch_operands = 0 : i64, tpu.core_type = #tpu.core_type<tc>, window_params = [{transform_indices = @transform_0, window_bounds = array<i64: 8, 8, 128>}, {pipeline_mode = #tpu.pipeline_mode<synchronous>, transform_indices = @transform_1, window_bounds = array<i64: 128, 64>}, {pipeline_mode = #tpu.pipeline_mode<synchronous>, transform_indices = @transform_2, window_bounds = array<i64: 1, 64>}, {pipeline_mode = #tpu.pipeline_mode<synchronous>, transform_indices = @transform_3, window_bounds = array<i64: 1, 64>}, {transform_indices = @transform_4, window_bounds = array<i64: 8, 128>}, {transform_indices = @transform_5, window_bounds = array<i64: 8, 128>}]} {
    %c0 = arith.constant 0 : index
    %c0_0 = arith.constant 0 : index
    %c0_1 = arith.constant 0 : index
    %0 = vector.load %arg1[%c0, %c0_0, %c0_1] : memref<8x8x128xf32, #tpu.memory_space<vmem>>, vector<8x8x128xf32>
    %c0_2 = arith.constant 0 : index
    %c0_3 = arith.constant 0 : index
    %1 = vector.load %arg2[%c0_2, %c0_3] : memref<128x64xf32, #tpu.memory_space<vmem>>, vector<128x64xf32>
    %2 = vector.shape_cast %0 : vector<8x8x128xf32> to vector<64x128xf32>
    %cst = arith.constant dense<0.000000e+00> : vector<64x64xf32>
    %3 = tpu.matmul %2, %1, %cst {dimension_numbers = #tpu.dot_dimension_numbers<[1], [0], [0], [1], [0, 0, 1, 1], [], []>} : vector<64x128xf32>, vector<128x64xf32>, vector<64x64xf32> -> vector<64x64xf32>
    %c0_4 = arith.constant 0 : index
    %c0_5 = arith.constant 0 : index
    %4 = vector.load %arg3[%c0_4, %c0_5] : memref<1x64xf32, #tpu.memory_space<vmem>>, vector<1x64xf32>
    %5 = vector.broadcast %4 : vector<1x64xf32> to vector<64x64xf32>
    %6 = arith.addf %3, %5 : vector<64x64xf32>
    %cst_6 = arith.constant 0.000000e+00 : f32
    %7 = vector.broadcast %cst_6 : f32 to vector<64x64xf32>
    %8 = arith.maximumf %6, %7 : vector<64x64xf32>
    %9 = vector.shape_cast %8 : vector<64x64xf32> to vector<8x8x64xf32>
    %c0_7 = arith.constant 0 : index
    %c0_8 = arith.constant 0 : index
    %10 = vector.load %arg4[%c0_7, %c0_8] : memref<1x64xf32, #tpu.memory_space<vmem>>, vector<1x64xf32>
    %11 = vector.shape_cast %10 : vector<1x64xf32> to vector<1x1x64xf32>
    %12 = vector.broadcast %11 : vector<1x1x64xf32> to vector<8x8x64xf32>
    %13 = arith.mulf %9, %12 : vector<8x8x64xf32>
    %cst_9 = arith.constant dense<0.000000e+00> : vector<8x8xf32>
    %14 = vector.multi_reduction <add>, %13, %cst_9 [2] : vector<8x8x64xf32> to vector<8x8xf32>
    %cst_10 = arith.constant dense<0xFF800000> : vector<8xf32>
    %15 = vector.multi_reduction <maximumf>, %14, %cst_10 [1] : vector<8x8xf32> to vector<8xf32>
    %16 = vector.shape_cast %15 : vector<8xf32> to vector<8x1xf32>
    %17 = vector.broadcast %16 : vector<8x1xf32> to vector<8x8xf32>
    %18 = arith.subf %14, %17 : vector<8x8xf32>
    %19 = math.exp %18 : vector<8x8xf32>
    %cst_11 = arith.constant dense<0.000000e+00> : vector<8xf32>
    %20 = vector.multi_reduction <add>, %19, %cst_11 [1] : vector<8x8xf32> to vector<8xf32>
    %21 = vector.shape_cast %20 : vector<8xf32> to vector<8x1xf32>
    %22 = vector.broadcast %21 : vector<8x1xf32> to vector<8x8xf32>
    %23 = arith.divf %19, %22 : vector<8x8xf32>
    %24 = vector.shape_cast %23 : vector<8x8xf32> to vector<8x1x8xf32>
    "tpu.trace_start"() <{level = 10 : i32, message = "bqt,bth->bqh"}> : () -> ()
    %cst_12 = arith.constant dense<0.000000e+00> : vector<8x1x128xf32>
    %25 = tpu.matmul %24, %0, %cst_12 {dimension_numbers = #tpu.dot_dimension_numbers<[2], [1], [1], [2], [0, 0, 0, 1, 1, 2], [0], [0]>} : vector<8x1x8xf32>, vector<8x8x128xf32>, vector<8x1x128xf32> -> vector<8x1x128xf32>
    "tpu.trace_stop"() : () -> ()
    %26 = vector.shape_cast %25 : vector<8x1x128xf32> to vector<8x128xf32>
    %c0_13 = arith.constant 0 : index
    %c0_14 = arith.constant 0 : index
    %27 = vector.load %arg5[%c0_13, %c0_14] : memref<8x128xf32, #tpu.memory_space<vmem>>, vector<8x128xf32>
    tpu.vector_store %arg5[%c0_13, %c0_14], %26 {strides = array<i32>} : memref<8x128xf32, #tpu.memory_space<vmem>>, vector<8x128xf32>,
    %cst_15 = arith.constant 0.000000e+00 : f32
    %28 = vector.broadcast %cst_15 : f32 to vector<8x120xf32>
    %29 = tpu.concatenate %23, %28 in 1 : vector<8x8xf32>, vector<8x120xf32> -> vector<8x128xf32>
    %c0_16 = arith.constant 0 : index
    %c0_17 = arith.constant 0 : index
    %30 = vector.load %arg6[%c0_16, %c0_17] : memref<8x128xf32, #tpu.memory_space<vmem>>, vector<8x128xf32>
    tpu.vector_store %arg6[%c0_16, %c0_17], %29 {strides = array<i32>} : memref<8x128xf32, #tpu.memory_space<vmem>>, vector<8x128xf32>,
    return
  }
  func.func @transform_0(%arg0: i32) -> (i32, i32, i32) {
    %c0_i32 = arith.constant 0 : i32
    %c0_i32_0 = arith.constant 0 : i32
    %c0_i32_1 = arith.constant 0 : i32
    return %arg0, %c0_i32, %c0_i32_0 : i32, i32, i32
  }
  func.func @transform_1(%arg0: i32) -> (i32, i32) {
    %c0_i32 = arith.constant 0 : i32
    %c0_i32_0 = arith.constant 0 : i32
    %c0_i32_1 = arith.constant 0 : i32
    return %c0_i32, %c0_i32_0 : i32, i32
  }
  func.func @transform_2(%arg0: i32) -> (i32, i32) {
    %c0_i32 = arith.constant 0 : i32
    %c0_i32_0 = arith.constant 0 : i32
    %c0_i32_1 = arith.constant 0 : i32
    return %c0_i32, %c0_i32_0 : i32, i32
  }
  func.func @transform_3(%arg0: i32) -> (i32, i32) {
    %c0_i32 = arith.constant 0 : i32
    %c0_i32_0 = arith.constant 0 : i32
    %c0_i32_1 = arith.constant 0 : i32
    return %c0_i32, %c0_i32_0 : i32, i32
  }
  func.func @transform_4(%arg0: i32) -> (i32, i32) {
    %c0_i32 = arith.constant 0 : i32
    %c0_i32_0 = arith.constant 0 : i32
    return %arg0, %c0_i32 : i32, i32
  }
  func.func @transform_5(%arg0: i32) -> (i32, i32) {
    %c0_i32 = arith.constant 0 : i32
    %c0_i32_0 = arith.constant 0 : i32
    return %arg0, %c0_i32 : i32, i32
  }
}

</mosaic_0001>

<bundles_post_ra>
// kernel: tpu_custom_call.1
= control target key start
LH: loop header
LB: loop body
LE: loop exit
PB: predicated region body
PF: predicated region fallthrough
CT: control target
= control target key end

     0   :  { %11 = vsyncpa [#allocation3], 0  ;;  %s1705_s0 = inlined_call_operand.vmem [shape: f32[8,8,128], index: 0, kind: input, shape index: {}]   ;;  %s1706_s1 = inlined_call_operand.vmem [shape: f32[128,64], index: 1, kind: input, shape index: {}]   ;;  %s1707_s2 = inlined_call_operand.vmem [shape: f32[1,64], index: 2, kind: input, shape index: {}]   ;;  %s1708_s3 = inlined_call_operand.vmem [shape: f32[1,64], index: 3, kind: input, shape index: {}]   ;;  %s1709_s4 = inlined_call_operand.hbm [shape: f32[8,128], index: 4, kind: output, shape index: {0}]   ;;  %s1710_s5 = inlined_call_operand.hbm [shape: f32[8,128], index: 5, kind: output, shape index: {1}]  }
   0x1   :  { %v44_v0 = vld [vmem:[%s1706_s1 + $0x78] sm:$0xff]  ;;  %v43_v1 = vld [vmem:[%s1706_s1 + $0x70] sm:$0xff]  ;;  %v42_v2 = vld [vmem:[%s1706_s1 + $0x68] sm:$0xff] }
   0x2   :  { %1215 = vmatprep.subr.mxu0 %v44_v0  ;;  %v41_v3 = vld [vmem:[%s1706_s1 + $0x60] sm:$0xff]  ;;  %v40_v5 = vld [vmem:[%s1706_s1 + $0x58] sm:$0xff]  ;;  %v39_v6 = vld [vmem:[%s1706_s1 + $0x50] sm:$0xff] }
   0x3   :  { %1216 = vmatpush3.msra.mxu0 %v44_v0  ;;  %v1432_v4 = vld [vmem:[%s1705_s0] sm:$0xff] }
   0x4   :  { %1217 = vmatprep.subr.mxu0 %v43_v1  ;;  %1247 = vmatprep.mubr.f32.mxu0 %v1432_v4 }
   0x5   :  { %1218 = vmatpush3.msra.mxu0 %v43_v1 }
   0x6   :  { %1219 = vmatprep.subr.mxu0 %v42_v2 }
   0x7   :  { %1220 = vmatpush3.msra.mxu0 %v42_v2 }
   0x8   :  { %1221 = vmatprep.subr.mxu0 %v41_v3 }
   0x9   :  { %1222 = vmatpush3.msra.mxu0 %v41_v3 }
   0xa   :  { %12 = vsyncpa [#allocation5], 0  ;;  %1223 = vmatprep.subr.mxu0 %v40_v5  ;;  %v38_v7 = vld [vmem:[%s1706_s1 + $0x48] sm:$0xff]  ;;  %v37_v8 = vld [vmem:[%s1706_s1 + $0x40] sm:$0xff]  ;;  %vm180_vm0 = vcmask 523264   ;;  %v213_v2 = vlaneseq  ;;  %vm247_vm1 = vcmask 1041409  }
   0xb   :  { %1224 = vmatpush3.msra.mxu0 %v40_v5  ;;  %v36_v9 = vld [vmem:[%s1706_s1 + $0x38] sm:$0xff]  ;;  %v35_v10 = vld [vmem:[%s1706_s1 + $0x30] sm:$0xff]  ;;  %v34_v11 = vld [vmem:[%s1706_s1 + $0x28] sm:$0xff]  ;;  %vm249_vm2 = vcmask 1042434   ;;  %vm251_vm3 = vcmask 1043459   ;;  %vm253_vm4 = vcmask 1044484  }
   0xc   :  { %1225 = vmatprep.subr.mxu0 %v39_v6  ;;  %v33_v12 = vld [vmem:[%s1706_s1 + $0x20] sm:$0xff]  ;;  %v32_v13 = vld [vmem:[%s1706_s1 + $0x18] sm:$0xff]  ;;  %v31_v14 = vld [vmem:[%s1706_s1 + $0x10] sm:$0xff]  ;;  %v214_v3 = vand.u32 127, %v213_v2  ;;  %v1527_v5 = vshrl.u32 %v213_v2, 7  ;;  %vm255_vm5 = vcmask 1045509  }
   0xd   :  { %1226 = vmatpush3.msra.mxu0 %v39_v6  ;;  %v30_v15 = vld [vmem:[%s1706_s1 + $0x8] sm:$0xff]  ;;  %v29_v16 = vld [vmem:[%s1706_s1] sm:$0xff]  ;;  %v1479_v18 = vld [vmem:[%s1705_s0 + $0x10] sm:$0xff]  ;;  %vm257_vm6 = vcmask 1046534   ;;  %vm259_vm7 = vcmask 1047559   ;;  %vm262_vm8 = vcmask 64512  }
   0xe   :  { %1227 = vmatprep.subr.mxu0 %v38_v7  ;;  %v1474_v17 = vld [vmem:[%s1705_s0 + $0x8] sm:$0xff]  ;;  %v1486_v19 = vld [vmem:[%s1705_s0 + $0x18] sm:$0xff]  ;;  %v1491_v20 = vld [vmem:[%s1705_s0 + $0x20] sm:$0xff]  ;;  %vm1384_vm9 = vmmov 0  }
   0xf   :  { %1228 = vmatpush3.msra.mxu0 %v38_v7  ;;  %v1498_v21 = vld [vmem:[%s1705_s0 + $0x28] sm:$0xff]  ;;  %v1503_v22 = vld [vmem:[%s1705_s0 + $0x30] sm:$0xff]  ;;  %v1510_v23 = vld [vmem:[%s1705_s0 + $0x38] sm:$0xff]  ;;  %v1530_v7 = vsub.s32 %v214_v3, %v1527_v5  ;;  %s1385_s0 = smov [#allocation4]  }
  0x10   :  { %1229 = vmatprep.subr.mxu0 %v37_v8  ;;  %v1165_v24 = vld [vmem:[%s1707_s2] ss:$0 sm:$0xff]  ;;  %s1153_s2 = sshll.u32 %s1385_s0, 4  ;;  %s1154_s2 = int_to_ptr.vmem [resolvable:$true] %s1153_s2 }
  0x11   :  { %1230 = vmatpush3.msra.mxu0 %v37_v8  ;;  %v1166_v28 = vld [vmem:[%s1708_s3] ss:$0 sm:$0xff]  ;;  %s1338_s3 = scalar_lea.vmem %s1154_s2, 128  ;;  %p1343_p1 = scmp.lt.s32.totalorder %s1154_s2, %s1154_s2 }
  0x12   :  { %1231 = vmatprep.subr.mxu0 %v36_v9  ;;  %p1339_p0 = scmp.ne.s32.totalorder %s1154_s2, %s1338_s3  ;;  %p1344_p2 = scmp.lt.s32.totalorder %s1338_s3, %s1338_s3 }
  0x13   :  { %1232 = vmatpush3.msra.mxu0 %v36_v9 }
  0x14   :  { %1233 = vmatprep.subr.mxu0 %v35_v10  ;;  %p1345_p3 = por %p1344_p2, %p1343_p1 }
  0x15   :  { %1234 = vmatpush3.msra.mxu0 %v35_v10 }
  0x16   :  { %1235 = vmatprep.subr.mxu0 %v34_v11  ;;  %p1346_p4 = pnand %p1345_p3, %p1339_p0 }
  0x17   :  { %1236 = vmatpush3.msra.mxu0 %v34_v11 }
  0x18   :  { %1237 = vmatprep.subr.mxu0 %v33_v12 }
  0x19   :  { %1238 = vmatpush3.msra.mxu0 %v33_v12 }
  0x1a   :  { %1239 = vmatprep.subr.mxu0 %v32_v13 }
  0x1b   :  { %1240 = vmatpush3.msra.mxu0 %v32_v13 }
  0x1c   :  { %1241 = vmatprep.subr.mxu0 %v31_v14 }
  0x1d   :  { %1242 = vmatpush3.msra.mxu0 %v31_v14 }
  0x1e   :  { %1243 = vmatprep.subr.mxu0 %v30_v15 }
  0x1f   :  { %1244 = vmatpush3.msra.mxu0 %v30_v15 }
  0x20   :  { %1245 = vmatprep.subr.mxu0 %v29_v16 }
  0x21   :  { %1246 = vmatpush3.msra.mxu0 %v29_v16 }
  0x22   :  { %1248 = vmatmul.mubr.f32.vlgmr.msra.gmra.mxu0 %v1474_v17 }
  0x23   :  { %1250 = vmatprep.mubr.f32.mxu0 %v1479_v18 }
  0x26   :  { %1251 = vmatmul.mubr.f32.gmra.mxu0 %v1486_v19 }
  0x27   :  { %1253 = vmatprep.mubr.f32.mxu0 %v1491_v20 }
  0x2a   :  { %1254 = vmatmul.mubr.f32.gmra.mxu0 %v1498_v21 }
  0x2b   :  { %1256 = vmatprep.mubr.f32.mxu0 %v1503_v22 }
  0x2e   :  { %1257 = vmatmul.mubr.f32.gmra.mxu0 %v1510_v23 }
  0xe2   :  { %v1249_v25 = vpop.f32.mrf.mxu0 }
  0xe3   :  { %v124_v26 = vadd.f32 %v1249_v25, %v1165_v24 }
  0xe4   :  { %v118_v27 = vpop.f32.mrf.mxu0 }
  0xe5   :  { %v158_v29 = vmax.f32 %v124_v26, 0.0  ;;  %v119_v30 = vadd.f32 %v1165_v24, %v118_v27 }
  0xe6   :  { %v1252_v31 = vpop.f32.mrf.mxu0 }
  0xe7   :  { %v157_v32 = vmax.f32 %v119_v30, 0.0  ;;  %v134_v33 = vadd.f32 %v1252_v31, %v1165_v24  ;;  %v173_v34 = vmul.f32 %v1166_v28, %v158_v29 }
  0xe8   :  { %v128_v35 = vpop.f32.mrf.mxu0 }
  0xe9   :  { %v160_v36 = vmax.f32 %v134_v33, 0.0  ;;  %v129_v37 = vadd.f32 %v1165_v24, %v128_v35  ;;  %v184_v38 = vsel %vm180_vm0, %v173_v34, 0.0  ;;  %v172_v39 = vmul.f32 %v1166_v28, %v157_v32 }
  0xea   :  { %185 = vadd.xlane.f32.xlu0 %v184_v38  ;;  %v1255_v40 = vpop.f32.mrf.mxu0  ;;  %v1382_v38 = vmov 0  }
  0xeb   :  { %v159_v41 = vmax.f32 %v129_v37, 0.0  ;;  %v144_v42 = vadd.f32 %v1255_v40, %v1165_v24  ;;  %v175_v43 = vmul.f32 %v1166_v28, %v160_v36  ;;  %v181_v45 = vsel %vm180_vm0, %v172_v39, 0.0  ;;  %1305 = vset.pattern.permute.xlu0 %v1382_v38  ;;  %1304 = vset.pattern.permute.xlu1 %v1382_v38 }
  0xec   :  { %v138_v44 = vpop.f32.mrf.mxu0  ;;  %v269_v39 = vsub.s32 0, %v1527_v5  ;;  %v273_v40 = vsub.s32 1, %v1527_v5 }
  0xed   :  { %v162_v46 = vmax.f32 %v144_v42, 0.0  ;;  %v139_v47 = vadd.f32 %v1165_v24, %v138_v44  ;;  %v190_v48 = vsel %vm180_vm0, %v175_v43, 0.0  ;;  %v174_v49 = vmul.f32 %v1166_v28, %v159_v41 }
  0xee   :  { %191 = vadd.xlane.f32.xlu1 %v190_v48  ;;  %v1258_v50 = vpop.f32.mrf.mxu0  ;;  %182 = vadd.xlane.f32.xlu0 %v181_v45  ;;  %v277_v41 = vsub.s32 2, %v1527_v5  ;;  %v281_v42 = vsub.s32 3, %v1527_v5 }
  0xef   :  { %v161_v51 = vmax.f32 %v139_v47, 0.0  ;;  %v154_v52 = vadd.f32 %v1258_v50, %v1165_v24  ;;  %v187_v54 = vsel %vm180_vm0, %v174_v49, 0.0  ;;  %v177_v58 = vmul.f32 %v1166_v28, %v162_v46 }
  0xf0   :  { %v148_v53 = vpop.f32.mrf.mxu0  ;;  %v285_v47 = vsub.s32 4, %v1527_v5 }
  0xf1   :  { %v164_v55 = vmax.f32 %v154_v52, 0.0  ;;  %v149_v56 = vadd.f32 %v1165_v24, %v148_v53  ;;  %v176_v57 = vmul.f32 %v1166_v28, %v161_v51  ;;  %v196_v61 = vsel %vm180_vm0, %v177_v58, 0.0 }
  0xf2   :  { %188 = vadd.xlane.f32.xlu1 %v187_v54  ;;  %v289_v54 = vsub.s32 5, %v1527_v5  ;;  %v293_v58 = vsub.s32 6, %v1527_v5 }
  0xf3   :  { %v163_v59 = vmax.f32 %v149_v56, 0.0  ;;  %v193_v60 = vsel %vm180_vm0, %v176_v57, 0.0  ;;  %v179_v63 = vmul.f32 %v1166_v28, %v164_v55 }
  0xf4   :  { %194 = vadd.xlane.f32.xlu0 %v193_v60 }
  0xf5   :  { %v178_v62 = vmul.f32 %v1166_v28, %v163_v59  ;;  %v202_v1 = vsel %vm180_vm0, %v179_v63, 0.0 }
  0xf6   :  { %197 = vadd.xlane.f32.xlu1 %v196_v61 }
  0xf7   :  { %v199_v0 = vsel %vm180_vm0, %v178_v62, 0.0  ;;  %v297_v62 = vsub.s32 7, %v1527_v5 }
  0xf8   :  { %200 = vadd.xlane.f32.xlu0 %v199_v0 }
  0xfa   :  { %203 = vadd.xlane.f32.xlu1 %v202_v1 }
 0x173   :  { %v186_v6 = vpop.xlane.xlu0 %185 }
 0x174   :  { %v222_v11 = vrot.slane %v186_v6, %v1530_v7 }
 0x177   :  { %v192_v8 = vpop.xlane.xlu1 %191  ;;  %v183_v9 = vpop.xlane.xlu0 %182 }
 0x178   :  { %v218_v10 = vrot.slane %v183_v9, %v1530_v7  ;;  %v230_v14 = vrot.slane %v192_v8, %v1530_v7 }
 0x17a   :  { %v248_v15 = vsel %vm247_vm1, %v222_v11, %v218_v10 }
 0x17b   :  { %v189_v12 = vpop.xlane.xlu1 %188 }
 0x17c   :  { %v226_v13 = vrot.slane %v189_v12, %v1530_v7 }
 0x17d   :  { %v195_v16 = vpop.xlane.xlu0 %194 }
 0x17e   :  { %v250_v24 = vsel %vm249_vm2, %v226_v13, %v248_v15  ;;  %v234_v25 = vrot.slane %v195_v16, %v1530_v7 }
 0x17f   :  { %v252_v26 = vsel %vm251_vm3, %v230_v14, %v250_v24  ;;  %v198_v27 = vpop.xlane.xlu1 %197 }
 0x180   :  { %v254_v28 = vsel %vm253_vm4, %v234_v25, %v252_v26  ;;  %v238_v29 = vrot.slane %v198_v27, %v1530_v7 }
 0x181   :  { %v201_v30 = vpop.xlane.xlu0 %200 }
 0x182   :  { %v242_v31 = vrot.slane %v201_v30, %v1530_v7  ;;  %v256_v32 = vsel %vm255_vm5, %v238_v29, %v254_v28 }
 0x183   :  { %v204_v33 = vpop.xlane.xlu1 %203 }
 0x184   :  { %v246_v34 = vrot.slane %v204_v33, %v1530_v7  ;;  %v258_v35 = vsel %vm257_vm6, %v242_v31, %v256_v32 }
 0x186   :  { %v260_v36 = vsel %vm259_vm7, %v246_v34, %v258_v35 }
 0x187   :  { %v263_v37 = vsel %vm262_vm8, %v260_v36, -inf }
 0x188   :  { %264 = vmax.xlane.f32.xlu0 %v263_v37 }
 0x211   :  { %v265_v43 = vpop.xlane.xlu0 %264 }
 0x212   :  { %v270_v44 = vrot.slane %v265_v43, %v269_v39  ;;  %v274_v45 = vrot.slane %v265_v43, %v273_v40  ;;  %v278_v46 = vrot.slane %v265_v43, %v277_v41  ;;  %v282_v48 = vrot.slane %v265_v43, %v281_v42 }
 0x213   :  { %v286_v55 = vrot.slane %v265_v43, %v285_v47  ;;  %v290_v59 = vrot.slane %v265_v43, %v289_v54  ;;  %v294_v63 = vrot.slane %v265_v43, %v293_v58  ;;  %v298_v2 = vrot.slane %v265_v43, %v297_v62 }
 0x214   :  { %v307_v49 = vsub.f32 %v183_v9, %v270_v44  ;;  %v308_v50 = vsub.f32 %v186_v6, %v274_v45  ;;  %v309_v51 = vsub.f32 %v189_v12, %v278_v46  ;;  %v310_v56 = vsub.f32 %v192_v8, %v282_v48 }
 0x215   :  { %v311_v60 = vsub.f32 %v195_v16, %v286_v55  ;;  %v312_v0 = vsub.f32 %v198_v27, %v290_v59  ;;  %v313_v3 = vsub.f32 %v201_v30, %v294_v63  ;;  %v314_v10 = vsub.f32 %v204_v33, %v298_v2 }
 0x216   :  { %v315_v52 = vmul.f32 1.442695, %v307_v49  ;;  %v317_v53 = vmul.f32 1.442695, %v308_v50  ;;  %v319_v57 = vmul.f32 1.442695, %v309_v51 }
 0x217   :  { %v321_v61 = vmul.f32 1.442695, %v310_v56  ;;  %v323_v1 = vmul.f32 1.442695, %v311_v60  ;;  %v325_v6 = vmul.f32 1.442695, %v312_v0 }
 0x218   :  { %1306 = vpow2.f32 %v315_v52  ;;  %v327_v11 = vmul.f32 1.442695, %v313_v3  ;;  %v329_v13 = vmul.f32 1.442695, %v314_v10  ;;  %v1383_v56 = vmov 0.0  }
 0x219   :  { %1308 = vpow2.f32 %v317_v53  ;;  %1259 = vmatprep.subr.mxu1 %v1383_v56  ;;  %1261 = vmatprep.mubr.msk.f32.mxu1 %vm1384_vm9, %v1383_v56 }
 0x21a   :  { %1310 = vpow2.f32 %v319_v57  ;;  %1260 = vmatpush3.msra.mxu1 %v1432_v4 }
 0x21b   :  { %1312 = vpow2.f32 %v321_v61  ;;  %1264 = vmatprep.subr.mxu1 %v1383_v56 }
 0x21c   :  { %1314 = vpow2.f32 %v323_v1 }
 0x21d   :  { %1316 = vpow2.f32 %v325_v6 }
 0x21e   :  { %1318 = vpow2.f32 %v327_v11 }
 0x21f   :  { %1320 = vpow2.f32 %v329_v13 }
 0x225   :  { %v1572_v8 = vpop.eup %1306 }
 0x226   :  { %v1574_v9 = vpop.eup %1308  ;;  %340 = vperm.xlu1 %1304, %v1572_v8  }
 0x227   :  { %343 = vperm.xlu0 %1305, %v1574_v9   ;;  %v1578_v12 = vpop.eup %1310 }
 0x228   :  { %v1581_v14 = vpop.eup %1312 }
 0x229   :  { %v1584_v15 = vpop.eup %1314 }
 0x22a   :  { %346 = vperm.xlu1 %1304, %v1578_v12   ;;  %v1587_v16 = vpop.eup %1316 }
 0x22b   :  { %v1590_v24 = vpop.eup %1318 }
 0x22c   :  { %v1593_v25 = vpop.eup %1320 }
 0x22e   :  { %349 = vperm.xlu1 %1304, %v1581_v14  }
 0x232   :  { %352 = vperm.xlu1 %1304, %v1584_v15  }
 0x236   :  { %355 = vperm.xlu1 %1304, %v1587_v16  }
 0x23a   :  { %358 = vperm.xlu1 %1304, %v1590_v24  }
 0x23e   :  { %361 = vperm.xlu1 %1304, %v1593_v25  }
 0x2a1   :  { %v341_v26 = vpop.permute.xlu1 %340 }
 0x2a2   :  { %v344_v30 = vpop.permute.xlu0 %343  ;;  %v366_v33 = vrot.slane %v341_v26, %v1530_v7 }
 0x2a3   :  { %v370_v32 = vrot.slane %v344_v30, %v1530_v7 }
 0x2a5   :  { %v347_v27 = vpop.permute.xlu1 %346  ;;  %v395_v38 = vsel %vm247_vm1, %v370_v32, %v366_v33 }
 0x2a6   :  { %v374_v34 = vrot.slane %v347_v27, %v1530_v7 }
 0x2a8   :  { %v396_v44 = vsel %vm249_vm2, %v374_v34, %v395_v38 }
 0x2a9   :  { %v350_v28 = vpop.permute.xlu1 %349 }
 0x2aa   :  { %v378_v35 = vrot.slane %v350_v28, %v1530_v7 }
 0x2ac   :  { %v397_v46 = vsel %vm251_vm3, %v378_v35, %v396_v44 }
 0x2ad   :  { %v353_v29 = vpop.permute.xlu1 %352 }
 0x2ae   :  { %v382_v36 = vrot.slane %v353_v29, %v1530_v7 }
 0x2b0   :  { %v398_v48 = vsel %vm253_vm4, %v382_v36, %v397_v46 }
 0x2b1   :  { %v356_v31 = vpop.permute.xlu1 %355 }
 0x2b2   :  { %v386_v43 = vrot.slane %v356_v31, %v1530_v7 }
 0x2b4   :  { %v399_v50 = vsel %vm255_vm5, %v386_v43, %v398_v48 }
 0x2b5   :  { %v359_v37 = vpop.permute.xlu1 %358 }
 0x2b6   :  { %v390_v45 = vrot.slane %v359_v37, %v1530_v7 }
 0x2b8   :  { %v400_v52 = vsel %vm257_vm6, %v390_v45, %v399_v50 }
 0x2b9   :  { %v362_v49 = vpop.permute.xlu1 %361 }
 0x2ba   :  { %v394_v51 = vrot.slane %v362_v49, %v1530_v7 }
 0x2bc   :  { %v401_v53 = vsel %vm259_vm7, %v394_v51, %v400_v52 }
 0x2bd   :  { %v403_v55 = vsel %vm262_vm8, %v401_v53, 0.0 }
 0x2be   :  { %404 = vadd.xlane.f32.xlu1 %v403_v55 }
 0x347   :  { %v405_v57 = vpop.xlane.xlu1 %404 }
 0x348   :  { %v410_v59 = vrot.slane %v405_v57, %v269_v39  ;;  %v414_v60 = vrot.slane %v405_v57, %v273_v40  ;;  %v418_v61 = vrot.slane %v405_v57, %v277_v41  ;;  %v422_v63 = vrot.slane %v405_v57, %v281_v42 }
 0x349   :  { %v426_v4 = vrot.slane %v405_v57, %v285_v47  ;;  %v430_v39 = vrot.slane %v405_v57, %v289_v54  ;;  %v434_v42 = vrot.slane %v405_v57, %v293_v58  ;;  %v438_v2 = vrot.slane %v405_v57, %v297_v62 }
 0x34a   :  { %1322 = vrcp.f32 %v410_v59 }
 0x34b   :  { %1324 = vrcp.f32 %v414_v60 }
 0x34c   :  { %1326 = vrcp.f32 %v418_v61 }
 0x34d   :  { %1328 = vrcp.f32 %v422_v63 }
 0x34e   :  { %1330 = vrcp.f32 %v426_v4 }
 0x34f   :  { %1332 = vrcp.f32 %v430_v39 }
 0x350   :  { %1334 = vrcp.f32 %v434_v42 }
 0x351   :  { %1336 = vrcp.f32 %v438_v2 }
 0x357   :  { %v1323_v0 = vpop.eup %1322 }
 0x358   :  { %v448_v40 = vmul.f32 %v1323_v0, %v1572_v8  ;;  %v1325_v41 = vpop.eup %1324 }
 0x359   :  { %v450_v47 = vmul.f32 %v1325_v41, %v1574_v9  ;;  %v1327_v1 = vpop.eup %1326 }
 0x35a   :  { %465 = vperm.xlu0 %1305, %v448_v40   ;;  %v452_v3 = vmul.f32 %v1327_v1, %v1578_v12  ;;  %v1329_v54 = vpop.eup %1328 }
 0x35b   :  { %v454_v6 = vmul.f32 %v1329_v54, %v1581_v14  ;;  %v1331_v8 = vpop.eup %1330 }
 0x35c   :  { %v456_v58 = vmul.f32 %v1331_v8, %v1584_v15  ;;  %v1333_v10 = vpop.eup %1332 }
 0x35d   :  { %v458_v9 = vmul.f32 %v1333_v10, %v1587_v16  ;;  %v1335_v11 = vpop.eup %1334 }
 0x35e   :  { %545 = vperm.xlu0 %1305, %v450_v47   ;;  %v460_v5 = vmul.f32 %v1335_v11, %v1590_v24  ;;  %v1337_v62 = vpop.eup %1336 }
 0x35f   :  { %v462_v12 = vmul.f32 %v1337_v62, %v1593_v25 }
 0x362   :  { %625 = vperm.xlu0 %1305, %v452_v3  }
 0x366   :  { %705 = vperm.xlu0 %1305, %v454_v6  }
 0x36a   :  { %785 = vperm.xlu0 %1305, %v456_v58  }
 0x36e   :  { %865 = vperm.xlu0 %1305, %v458_v9  }
 0x372   :  { %945 = vperm.xlu0 %1305, %v460_v5  }
 0x376   :  { %1025 = vperm.xlu0 %1305, %v462_v12  }
 0x3d5   :  { %v466_v13 = vpop.permute.xlu0 %465 }
 0x3d6   :  { %v470_v14 = vrot.slane %v466_v13, %v1530_v7 }
 0x3d8   :  { %1262 = vmatmul.mubr.msk.f32.vlgmr.msra.gmra.mxu1 %vm262_vm8, %v470_v14 }
 0x3d9   :  { %1265 = vmatpush3.msra.mxu1 %v1474_v17  ;;  %v546_v15 = vpop.permute.xlu0 %545  ;;  %1266 = vmatprep.mubr.msk.f32.mxu1 %vm1384_vm9, %v1383_v56 }
 0x3da   :  { %v550_v16 = vrot.slane %v546_v15, %v1530_v7  ;;  %1269 = vmatprep.subr.mxu1 %v1383_v56 }
 0x3dc   :  { %1267 = vmatmul.mubr.msk.f32.vlgmr.msra.gmra.mxu1 %vm262_vm8, %v550_v16  ;;  %v1127_v29 = vsel %vm247_vm1, %v550_v16, %v470_v14 }
 0x3dd   :  { %1270 = vmatpush3.msra.mxu1 %v1479_v18  ;;  %v626_v24 = vpop.permute.xlu0 %625  ;;  %1271 = vmatprep.mubr.msk.f32.mxu1 %vm1384_vm9, %v1383_v56 }
 0x3de   :  { %v630_v25 = vrot.slane %v626_v24, %v1530_v7  ;;  %1274 = vmatprep.subr.mxu1 %v1383_v56 }
 0x3e0   :  { %1272 = vmatmul.mubr.msk.f32.vlgmr.msra.gmra.mxu1 %vm262_vm8, %v630_v25  ;;  %v1128_v30 = vsel %vm249_vm2, %v630_v25, %v1127_v29 }
 0x3e1   :  { %1275 = vmatpush3.msra.mxu1 %v1486_v19  ;;  %v706_v17 = vpop.permute.xlu0 %705  ;;  %1276 = vmatprep.mubr.msk.f32.mxu1 %vm1384_vm9, %v1383_v56 }
 0x3e2   :  { %v710_v26 = vrot.slane %v706_v17, %v1530_v7  ;;  %1279 = vmatprep.subr.mxu1 %v1383_v56 }
 0x3e4   :  { %1277 = vmatmul.mubr.msk.f32.vlgmr.msra.gmra.mxu1 %vm262_vm8, %v710_v26  ;;  %v1129_v31 = vsel %vm251_vm3, %v710_v26, %v1128_v30 }
 0x3e5   :  { %1280 = vmatpush3.msra.mxu1 %v1491_v20  ;;  %v786_v18 = vpop.permute.xlu0 %785  ;;  %1281 = vmatprep.mubr.msk.f32.mxu1 %vm1384_vm9, %v1383_v56 }
 0x3e6   :  { %v790_v27 = vrot.slane %v786_v18, %v1530_v7  ;;  %1284 = vmatprep.subr.mxu1 %v1383_v56 }
 0x3e8   :  { %1282 = vmatmul.mubr.msk.f32.vlgmr.msra.gmra.mxu1 %vm262_vm8, %v790_v27  ;;  %v1130_v32 = vsel %vm253_vm4, %v790_v27, %v1129_v31 }
 0x3e9   :  { %1285 = vmatpush3.msra.mxu1 %v1498_v21  ;;  %v866_v19 = vpop.permute.xlu0 %865  ;;  %1286 = vmatprep.mubr.msk.f32.mxu1 %vm1384_vm9, %v1383_v56 }
 0x3ea   :  { %v870_v28 = vrot.slane %v866_v19, %v1530_v7  ;;  %1289 = vmatprep.subr.mxu1 %v1383_v56 }
 0x3ec   :  { %1287 = vmatmul.mubr.msk.f32.vlgmr.msra.gmra.mxu1 %vm262_vm8, %v870_v28  ;;  %v1131_v33 = vsel %vm255_vm5, %v870_v28, %v1130_v32 }
 0x3ed   :  { %1290 = vmatpush3.msra.mxu1 %v1503_v22  ;;  %v946_v20 = vpop.permute.xlu0 %945  ;;  %1291 = vmatprep.mubr.msk.f32.mxu1 %vm1384_vm9, %v1383_v56 }
 0x3ee   :  { %v950_v21 = vrot.slane %v946_v20, %v1530_v7  ;;  %1294 = vmatprep.subr.mxu1 %v1383_v56 }
 0x3f0   :  { %1292 = vmatmul.mubr.msk.f32.vlgmr.msra.gmra.mxu1 %vm262_vm8, %v950_v21  ;;  %v1132_v35 = vsel %vm257_vm6, %v950_v21, %v1131_v33 }
 0x3f1   :  { %1295 = vmatpush3.msra.mxu1 %v1510_v23  ;;  %v1026_v22 = vpop.permute.xlu0 %1025  ;;  %1296 = vmatprep.mubr.msk.f32.mxu1 %vm1384_vm9, %v1383_v56 }
 0x3f2   :  { %v1030_v34 = vrot.slane %v1026_v22, %v1530_v7 }
 0x3f4   :  { %1297 = vmatmul.mubr.msk.f32.vlgmr.msra.gmra.mxu1 %vm262_vm8, %v1030_v34  ;;  %v1133_v36 = vsel %vm259_vm7, %v1030_v34, %v1132_v35 }
 0x3f5   :  { %v1135_v37 = vsel %vm262_vm8, %v1133_v36, 0.0 }
 0x3f6   :  { %1136 = vst [vmem:[#allocation4] sm:$0xff] %v1135_v37 }
 0x3f7   :  { %1349 = shalt.err (!%p1346_p4)
}
 0x3f8   :  { %1156 = dma.vmem_to_hbm [thread:$0]  %s1154_s2, 128, %s1710_s5, [#allocation5]  }
 0x3f9   :  { %s1386_s5 = smov [#allocation2]  }
 0x3fa   :  { %s1143_s21 = sshll.u32 %s1386_s5, 4  ;;  %s1144_s21 = int_to_ptr.vmem [resolvable:$true] %s1143_s21 }
 0x3fb   :  { %s1358_s22 = scalar_lea.vmem %s1144_s21, 128  ;;  %p1363_p6 = scmp.lt.s32.totalorder %s1144_s21, %s1144_s21 }
 0x3fc   :  { %p1359_p5 = scmp.ne.s32.totalorder %s1144_s21, %s1358_s22  ;;  %p1364_p7 = scmp.lt.s32.totalorder %s1358_s22, %s1358_s22 }
 0x3fe   :  { %p1365_p8 = por %p1364_p7, %p1363_p6 }
 0x400   :  { %p1366_p9 = pnand %p1365_p8, %p1359_p5 }
 0x498   :  { %v539_v23 = vpop.f32.mrf.mxu1 }
 0x49a   :  { %v1263_v7 = vpop.f32.mrf.mxu1 }
 0x49c   :  { %v619_v38 = vpop.f32.mrf.mxu1 }
 0x49d   :  { %v1111_v52 = vrot.slane %v619_v38, 7 }
 0x49e   :  { %v1268_v43 = vpop.f32.mrf.mxu1 }
 0x49f   :  { %v1112_v60 = vsel %vm247_vm1, %v1111_v52, %v539_v23 }
 0x4a0   :  { %v699_v44 = vpop.f32.mrf.mxu1 }
 0x4a1   :  { %v1113_v53 = vrot.slane %v699_v44, 6 }
 0x4a2   :  { %v1273_v45 = vpop.f32.mrf.mxu1 }
 0x4a3   :  { %v1114_v63 = vsel %vm249_vm2, %v1113_v53, %v1112_v60 }
 0x4a4   :  { %v779_v46 = vpop.f32.mrf.mxu1 }
 0x4a5   :  { %v1115_v56 = vrot.slane %v779_v46, 5 }
 0x4a6   :  { %v1278_v48 = vpop.f32.mrf.mxu1 }
 0x4a7   :  { %v1116_v39 = vsel %vm251_vm3, %v1115_v56, %v1114_v63 }
 0x4a8   :  { %v859_v49 = vpop.f32.mrf.mxu1 }
 0x4a9   :  { %v1117_v57 = vrot.slane %v859_v49, 4 }
 0x4aa   :  { %v1283_v50 = vpop.f32.mrf.mxu1 }
 0x4ab   :  { %v1118_v40 = vsel %vm253_vm4, %v1117_v57, %v1116_v39 }
 0x4ac   :  { %v939_v51 = vpop.f32.mrf.mxu1 }
 0x4ad   :  { %v1119_v61 = vrot.slane %v939_v51, 3 }
 0x4ae   :  { %v1288_v55 = vpop.f32.mrf.mxu1 }
 0x4af   :  { %v1120_v42 = vsel %vm255_vm5, %v1119_v61, %v1118_v40 }
 0x4b0   :  { %v1019_v59 = vpop.f32.mrf.mxu1 }
 0x4b1   :  { %v1121_v4 = vrot.slane %v1019_v59, 2 }
 0x4b2   :  { %v1293_v0 = vpop.f32.mrf.mxu1 }
 0x4b3   :  { %v1122_v2 = vsel %vm257_vm6, %v1121_v4, %v1120_v42 }
 0x4b4   :  { %v1099_v41 = vpop.f32.mrf.mxu1 }
 0x4b5   :  { %v1123_v47 = vrot.slane %v1099_v41, 1 }
 0x4b6   :  { %v1298_v1 = vpop.f32.mrf.mxu1 }
 0x4b7   :  { %v1124_v3 = vsel %vm259_vm7, %v1123_v47, %v1122_v2 }
 0x4b8   :  { %1126 = vst [vmem:[#allocation2] sm:$0xff] %v1124_v3 }
 0x4b9   :  { %1369 = shalt.err (!%p1366_p9)
}
 0x4ba   :  { %1146 = dma.vmem_to_hbm [thread:$0]  %s1144_s21, 128, %s1709_s4, [#allocation3]  }
 0x4bb   :  { %1378 = dma.done.wait [#allocation3], 128  }
 0x4bc   :  { %1379 = vsyncadd [#allocation3], 4294967168 }
 0x4bd   :  { %1380 = dma.done.wait [#allocation5], 128  }
 0x4be   :  { %1381 = vsyncadd [#allocation5], 4294967168 }
 0x4bf   :  { %1163 = vsyncpa [#allocation3], 1 }
 0x4c0   :  { %1164 = vsyncpa [#allocation5], 1 }

</bundles_post_ra>
